<compile_context>
chip_gen: v7x
topology: tpu7x:2x2x1
jax: 0.10.0
libtpu: 0.0.40
codegen_flags: <defaults>
</compile_context>

<pallas_src>
import math

import numpy as np
import jax
import jax.numpy as jnp
from jax import lax
from jax.experimental import pallas as pl
from jax.experimental.pallas import tpu as pltpu


def _round_up(v, m):
    return ((v + m - 1) // m) * m


def _pick_block_batch(B, C, lane_target=512):
    """Batch block `bt` with bt*C a multiple of 128 (lane-dense stores),
    sized toward `lane_target` lanes and preferring >= 2 grid steps (v7x 2-TC)."""
    bt_align = 128 // math.gcd(C, 128)
    b_pad_min = _round_up(B, bt_align)                 # smallest legal padded batch
    bt = bt_align * max(1, lane_target // max(1, bt_align * C))
    bt = min(bt, b_pad_min)                            # don't over-pad tiny batches
    if bt >= b_pad_min and b_pad_min >= 2 * bt_align:  # keep >=2 steps when possible
        bt = _round_up((b_pad_min + 1) // 2, bt_align)
    return bt


def _vmem_limit_bytes(N, Fp, bt, btC, x_itemsize, out_itemsize):
    """Rough VMEM footprint (double-buffered I/O + constants + live temporaries)."""
    io = 2 * N * btC * (x_itemsize + out_itemsize)
    consts = 2 * ((2 * Fp * N + 2 * N * Fp) * x_itemsize
                  + (4 * btC + 2 * btC * bt) * 4)
    interm = (12 * Fp * btC + Fp * Fp * bt + 8 * Fp * bt) * 4
    est = 2 * (io + consts + interm) + (8 << 20)
    return int(min(48 << 20, max(16 << 20, _round_up(est, 1 << 20))))


def _make_asb_kernel(F, Fp, mxu_dtype, adaptive_filter):
    k_rank = (F - 1) // 2          # lower-median rank (matches torch.median)
    BIG = 3.0e38                   # finite f32 sentinel for padded frequency rows

    def kernel(x_ref, fwd_ref, invr_ref, invi_ref, w_ref, sel_ref, selt_ref,
               thr_ref, o_ref):
        x = x_ref[...]                                                       # (N, btC)

        # ---- forward rFFT (ortho): one stacked MXU matmul [cos; -sin] @ x ----
        xs = jnp.dot(fwd_ref[...], x, preferred_element_type=jnp.float32)   # (2Fp, btC)
        xr = xs[:Fp]                                                         # (Fp, btC)
        xi = xs[Fp:]                                                         # (Fp, btC)

        w = w_ref[...]                                                       # (4, btC)
        wr, wi = w[0:1], w[1:2]

        if adaptive_filter:
            whr, whi = w[2:3], w[3:4]

            # ---- per-(freq, batch) energy: channel segment-sum as selector matmul ----
            e2 = xr * xr + xi * xi                                           # (Fp, btC)
            energy = jnp.dot(e2, sel_ref[...],
                             preferred_element_type=jnp.float32)             # (Fp, bt)

            # ---- per-batch lower median over the F real frequencies (rank count) ----
            row = lax.broadcasted_iota(jnp.int32, energy.shape, 0)           # (Fp, bt)
            e_med = jnp.where(row < F, energy, BIG)                          # hide padding
            le = (e_med[None, :, :] <= e_med[:, None, :])                    # (Fp, Fp, bt)
            cnt = jnp.sum(le.astype(jnp.float32), axis=1)                    # (Fp, bt)
            cand = jnp.where(cnt >= float(k_rank + 1), e_med, BIG)
            median = jnp.min(cand, axis=0, keepdims=True)                    # (1, bt)
            # TODO(synk): for large F replace the O(F^2) rank count with a log2(F)
            # value binary search (or put Fp on the lane axis); F is tiny here.

            # ---- adaptive high-freq mask (forward value of the STE), divide-free ----
            thr = thr_ref[0]
            mask = (energy > thr * (median + 1e-6)).astype(jnp.float32)      # (Fp, bt)
            mask_full = jnp.dot(mask, selt_ref[...],
                                preferred_element_type=jnp.float32)          # (Fp, btC)
            Wr = wr + mask_full * whr
            Wi = wi + mask_full * whi
        else:
            Wr, Wi = wr, wi

        # ---- complex weighting + inverse rFFT (ortho), no stacked-concat temporary ----
        yr = (xr * Wr - xi * Wi).astype(mxu_dtype)
        yi = (xr * Wi + xi * Wr).astype(mxu_dtype)
        y = (jnp.dot(invr_ref[...], yr, preferred_element_type=jnp.float32)
             + jnp.dot(invi_ref[...], yi, preferred_element_type=jnp.float32))  # (N, btC)
        o_ref[...] = y.astype(o_ref.dtype)

    return kernel


def adaptive_spectral_block(x, complex_weight, complex_weight_high, threshold,
                            adaptive_filter=True, block_batch=None,
                            mxu_dtype=jnp.float32):
    """x: (B, N, C); complex_weight*: (C, 2); threshold: (1,).

    Note: mxu_dtype=jnp.bfloat16 is recommended on v5e (bf16-native MXU); the
    mask/median/elementwise math stays in f32 either way.
    """
    B, N, C = x.shape
    F = N // 2 + 1
    f_align = 16 if jnp.dtype(mxu_dtype).itemsize < 4 else 8
    Fp = _round_up(F, f_align)                  # sublane-aligned frequency count

    bt_align = 128 // math.gcd(C, 128)
    bt = block_batch if block_batch is not None else _pick_block_batch(B, C)
    bt = _round_up(max(1, int(bt)), bt_align)   # always lane-dense: bt*C % 128 == 0
    B_pad = _round_up(B, bt)
    nb = B_pad // bt
    btC = bt * C

    # ---- ortho DFT matrices: stacked forward [cos; -sin], split inverse ----
    n = np.arange(N)
    f = np.arange(F)
    ang = 2.0 * np.pi * np.outer(f, n) / N                    # (F, N)
    scale = 1.0 / np.sqrt(N)
    cosM = np.cos(ang) * scale
    sinM = -np.sin(ang) * scale
    cf = np.full((F,), 2.0)
    cf[0] = 1.0
    if N % 2 == 0:
        cf[-1] = 1.0

    fwd = np.zeros((2 * Fp, N), np.float32)
    fwd[:F, :] = cosM
    fwd[Fp:Fp + F, :] = sinM
    invr = np.zeros((N, Fp), np.float32)
    invi = np.zeros((N, Fp), np.float32)
    invr[:, :F] = (cosM * cf[:, None]).T                      # (N, F)
    invi[:, :F] = (sinM * cf[:, None]).T                      # (N, F)
    fwd_j = jnp.asarray(fwd, dtype=mxu_dtype)
    invr_j = jnp.asarray(invr, dtype=mxu_dtype)
    invi_j = jnp.asarray(invi, dtype=mxu_dtype)

    # ---- per-batch channel-sum selector S (btC, bt) and its transpose ----
    sel = np.zeros((btC, bt), np.float32)
    sel[np.arange(btC), np.arange(btC) // C] = 1.0
    sel_j = jnp.asarray(sel)
    selt_j = jnp.asarray(np.ascontiguousarray(sel.T))

    # ---- weights fused into one lane-wide (4, bt*C) operand ----
    cw = jnp.asarray(complex_weight, jnp.float32)
    cwh = (jnp.asarray(complex_weight_high, jnp.float32) if adaptive_filter
           else jnp.zeros_like(cw))
    w4 = jnp.stack([jnp.tile(cw[:, 0], bt), jnp.tile(cw[:, 1], bt),
                    jnp.tile(cwh[:, 0], bt), jnp.tile(cwh[:, 1], bt)], axis=0)

    thr = jnp.asarray(threshold, jnp.float32).reshape((1,))

    # ---- lane-dense layout: (B, N, C) -> (N, B_pad*C); host-side MXU-dtype cast ----
    xp = x if B_pad == B else jnp.pad(x, ((0, B_pad - B), (0, 0), (0, 0)))
    x_cols = jnp.reshape(jnp.transpose(xp, (1, 0, 2)), (N, B_pad * C))
    if jnp.dtype(mxu_dtype) != jnp.dtype(x_cols.dtype):
        x_cols = x_cols.astype(mxu_dtype)      # halve HBM->VMEM bytes on the bf16 path
    # TODO(synk): for stacked layers keep activations in this (N, B*C) layout between
    # blocks (or fetch (bt, N, C) tiles and rearrange in-kernel) to avoid the
    # host transpose round-trip per layer.

    vmem_limit = _vmem_limit_bytes(N, Fp, bt, btC,
                                   jnp.dtype(mxu_dtype).itemsize,
                                   jnp.dtype(x.dtype).itemsize)

    # TODO(synk): mark the grid-invariant operands (fwd/invr/invi/w4/sel/selt) with
    # pipeline_mode=pl.Buffered(1) once single-buffered pallas_call operands are
    # supported in the deployed JAX version (small VMEM/DMA-descriptor win).
    out_cols = pl.pallas_call(
        _make_asb_kernel(F, Fp, mxu_dtype, adaptive_filter),
        out_shape=jax.ShapeDtypeStruct((N, B_pad * C), x.dtype),
        grid=(nb,),
        in_specs=[
            pl.BlockSpec((N, btC), lambda b: (0, b)),                 # x column slab
            pl.BlockSpec((2 * Fp, N), lambda b: (0, 0)),              # stacked forward DFT
            pl.BlockSpec((N, Fp), lambda b: (0, 0)),                  # inverse DFT (real)
            pl.BlockSpec((N, Fp), lambda b: (0, 0)),                  # inverse DFT (imag)
            pl.BlockSpec((4, btC), lambda b: (0, 0)),                 # fused weights
            pl.BlockSpec((btC, bt), lambda b: (0, 0)),                # channel-sum selector
            pl.BlockSpec((bt, btC), lambda b: (0, 0)),                # selector transpose
            pl.BlockSpec(memory_space=pltpu.MemorySpace.SMEM),        # threshold scalar
        ],
        out_specs=pl.BlockSpec((N, btC), lambda b: (0, b)),
        compiler_params=pltpu.CompilerParams(
            dimension_semantics=("parallel",),
            vmem_limit_bytes=vmem_limit),
    )(x_cols, fwd_j, invr_j, invi_j, w4, sel_j, selt_j, thr)

    out = jnp.transpose(jnp.reshape(out_cols, (N, B_pad, C)), (1, 0, 2))
    return out[:B] if B_pad != B else out


def _reference(x, cw, cwh, threshold):
    """Pure-JAX reference mirroring the PyTorch forward."""
    B, N, C = x.shape
    xf = jnp.fft.rfft(x.astype(jnp.float32), axis=1, norm='ortho')        # (B, F, C)
    w = cw[:, 0] + 1j * cw[:, 1]
    xw = xf * w
    energy = jnp.sum(jnp.abs(xf) ** 2, axis=-1)                           # (B, F)
    F = energy.shape[1]
    med = jnp.sort(energy, axis=1)[:, (F - 1) // 2][:, None]              # lower median
    mask = (energy / (med + 1e-6) > threshold[0]).astype(jnp.float32)[..., None]
    wh = cwh[:, 0] + 1j * cwh[:, 1]
    xw = xw + (xf * mask) * wh
    y = jnp.fft.irfft(xw, n=N, axis=1, norm='ortho')
    return y.astype(x.dtype)


if __name__ == "__main__":
    key = jax.random.PRNGKey(0)
    k1, k2, k3, k4, k5 = jax.random.split(key, 5)

    B, N, C = 2, 16, 32        # dim == C
    x = jax.random.normal(k1, (B, N, C), dtype=jnp.float32)
    # TODO(synk): trunc_normal_ init approximated with plain normal * 0.02 (synthetic params).
    complex_weight = (jax.random.normal(k2, (C, 2)) * 0.02).astype(jnp.float32)
    complex_weight_high = (jax.random.normal(k3, (C, 2)) * 0.02).astype(jnp.float32)
    threshold = jax.random.uniform(k4, (1,), dtype=jnp.float32)           # torch.rand(1)

    # --- case 1: small batch -> padded to a 128-lane block (btC = 128) ---
    out = adaptive_spectral_block(x, complex_weight, complex_weight_high, threshold)
    out = jax.block_until_ready(out)
    ref = _reference(x, complex_weight, complex_weight_high, threshold)
    assert out.shape == (B, N, C) and out.dtype == x.dtype
    assert jnp.allclose(out, ref, atol=2e-4, rtol=2e-4), "case 1 mismatch vs reference"

    # --- case 2: multi-step parallel grid + batch padding (B=10, bt=4 -> 3 steps) ---
    B2 = 10
    x2 = jax.random.normal(k5, (B2, N, C), dtype=jnp.float32)
    out2 = adaptive_spectral_block(x2, complex_weight, complex_weight_high, threshold,
                                   block_batch=4)
    out2 = jax.block_until_ready(out2)
    ref2 = _reference(x2, complex_weight, complex_weight_high, threshold)
    assert out2.shape == (B2, N, C)
    assert jnp.allclose(out2, ref2, atol=2e-4, rtol=2e-4), "case 2 mismatch vs reference"

    # --- case 3: bf16 MXU path smoke test (loose bound: the hard threshold mask is a
    #     discontinuity, so exact agreement with the f32 reference is not guaranteed) ---
    out3 = adaptive_spectral_block(x, complex_weight, complex_weight_high, threshold,
                                   mxu_dtype=jnp.bfloat16)
    out3 = jax.block_until_ready(out3)
    assert out3.shape == (B, N, C)
    assert bool(jnp.all(jnp.isfinite(out3)))
    assert float(jnp.max(jnp.abs(out3 - ref))) < 0.5, "bf16 path produced garbage"

    print("KERNEL_OK")
</pallas_src>

<mosaic_0001>
module attributes {stable_mosaic.version = 11 : i64} {
  func.func @kernel(%arg0: i32, %arg1: memref<16x128xf32, #tpu.memory_space<vmem>>, %arg2: memref<32x16xf32, #tpu.memory_space<vmem>>, %arg3: memref<16x16xf32, #tpu.memory_space<vmem>>, %arg4: memref<16x16xf32, #tpu.memory_space<vmem>>, %arg5: memref<4x128xf32, #tpu.memory_space<vmem>>, %arg6: memref<128x4xf32, #tpu.memory_space<vmem>>, %arg7: memref<4x128xf32, #tpu.memory_space<vmem>>, %arg8: memref<1xf32, #tpu.memory_space<smem>>, %arg9: memref<16x128xf32, #tpu.memory_space<vmem>>) attributes {dimension_semantics = [#tpu.dimension_semantics<parallel>], iteration_bounds = array<i64: 1>, scalar_prefetch = 0 : i64, scratch_operands = 0 : i64, tpu.core_type = #tpu.core_type<tc>, window_params = [{transform_indices = @transform_0, window_bounds = array<i64: 16, 128>}, {pipeline_mode = #tpu.pipeline_mode<synchronous>, transform_indices = @transform_1, window_bounds = array<i64: 32, 16>}, {pipeline_mode = #tpu.pipeline_mode<synchronous>, transform_indices = @transform_2, window_bounds = array<i64: 16, 16>}, {pipeline_mode = #tpu.pipeline_mode<synchronous>, transform_indices = @transform_3, window_bounds = array<i64: 16, 16>}, {pipeline_mode = #tpu.pipeline_mode<synchronous>, transform_indices = @transform_4, window_bounds = array<i64: 4, 128>}, {pipeline_mode = #tpu.pipeline_mode<synchronous>, transform_indices = @transform_5, window_bounds = array<i64: 128, 4>}, {pipeline_mode = #tpu.pipeline_mode<synchronous>, transform_indices = @transform_6, window_bounds = array<i64: 4, 128>}, {transform_indices = @transform_7, window_bounds = array<i64: 1>}, {transform_indices = @transform_8, window_bounds = array<i64: 16, 128>}]} {
    %c0 = arith.constant 0 : index
    %c0_0 = arith.constant 0 : index
    %0 = vector.load %arg1[%c0, %c0_0] : memref<16x128xf32, #tpu.memory_space<vmem>>, vector<16x128xf32>
    %c0_1 = arith.constant 0 : index
    %c0_2 = arith.constant 0 : index
    %1 = vector.load %arg2[%c0_1, %c0_2] : memref<32x16xf32, #tpu.memory_space<vmem>>, vector<32x16xf32>
    %cst = arith.constant dense<0.000000e+00> : vector<32x128xf32>
    %2 = tpu.matmul %1, %0, %cst {dimension_numbers = #tpu.dot_dimension_numbers<[1], [0], [0], [1], [0, 0, 1, 1], [], []>} : vector<32x16xf32>, vector<16x128xf32>, vector<32x128xf32> -> vector<32x128xf32>
    %3 = vector.extract_strided_slice %2 {offsets = [0, 0], sizes = [16, 128], strides = [1, 1]} : vector<32x128xf32> to vector<16x128xf32>
    %4 = vector.extract_strided_slice %2 {offsets = [16, 0], sizes = [16, 128], strides = [1, 1]} : vector<32x128xf32> to vector<16x128xf32>
    %c0_3 = arith.constant 0 : index
    %c0_4 = arith.constant 0 : index
    %5 = vector.load %arg5[%c0_3, %c0_4] : memref<4x128xf32, #tpu.memory_space<vmem>>, vector<4x128xf32>
    %6 = vector.extract_strided_slice %5 {offsets = [0, 0], sizes = [1, 128], strides = [1, 1]} : vector<4x128xf32> to vector<1x128xf32>
    %7 = vector.extract_strided_slice %5 {offsets = [1, 0], sizes = [1, 128], strides = [1, 1]} : vector<4x128xf32> to vector<1x128xf32>
    %8 = vector.extract_strided_slice %5 {offsets = [2, 0], sizes = [1, 128], strides = [1, 1]} : vector<4x128xf32> to vector<1x128xf32>
    %9 = vector.extract_strided_slice %5 {offsets = [3, 0], sizes = [1, 128], strides = [1, 1]} : vector<4x128xf32> to vector<1x128xf32>
    %10 = arith.mulf %3, %3 : vector<16x128xf32>
    %11 = arith.mulf %4, %4 : vector<16x128xf32>
    %12 = arith.addf %10, %11 : vector<16x128xf32>
    %c0_5 = arith.constant 0 : index
    %c0_6 = arith.constant 0 : index
    %13 = vector.load %arg6[%c0_5, %c0_6] : memref<128x4xf32, #tpu.memory_space<vmem>>, vector<128x4xf32>
    %cst_7 = arith.constant dense<0.000000e+00> : vector<16x4xf32>
    %14 = tpu.matmul %12, %13, %cst_7 {dimension_numbers = #tpu.dot_dimension_numbers<[1], [0], [0], [1], [0, 0, 1, 1], [], []>} : vector<16x128xf32>, vector<128x4xf32>, vector<16x4xf32> -> vector<16x4xf32>
    %15 = tpu.iota {dimensions = array<i32: 0>} : vector<16x4xi32>
    %c9_i32 = arith.constant 9 : i32
    %16 = vector.broadcast %c9_i32 : i32 to vector<16x4xi32>
    %17 = arith.cmpi slt, %15, %16 : vector<16x4xi32>
    %cst_8 = arith.constant 3.000000e+38 : f32
    %18 = vector.broadcast %cst_8 : f32 to vector<16x4xf32>
    %19 = arith.select %17, %14, %18 : vector<16x4xi1>, vector<16x4xf32>
    %20 = vector.shape_cast %19 : vector<16x4xf32> to vector<1x16x4xf32>
    %21 = vector.shape_cast %19 : vector<16x4xf32> to vector<16x1x4xf32>
    %22 = vector.broadcast %20 : vector<1x16x4xf32> to vector<16x16x4xf32>
    %23 = vector.broadcast %21 : vector<16x1x4xf32> to vector<16x16x4xf32>
    %24 = arith.cmpf ole, %22, %23 : vector<16x16x4xf32>
    %25 = arith.extui %24 : vector<16x16x4xi1> to vector<16x16x4xi32>
    %26 = arith.sitofp %25 : vector<16x16x4xi32> to vector<16x16x4xf32>
    %cst_9 = arith.constant dense<0.000000e+00> : vector<16x4xf32>
    %27 = vector.multi_reduction <add>, %26, %cst_9 [1] : vector<16x16x4xf32> to vector<16x4xf32>
    %cst_10 = arith.constant 5.000000e+00 : f32
    %28 = vector.broadcast %cst_10 : f32 to vector<16x4xf32>
    %29 = arith.cmpf oge, %27, %28 : vector<16x4xf32>
    %cst_11 = arith.constant 3.000000e+38 : f32
    %30 = vector.broadcast %cst_11 : f32 to vector<16x4xf32>
    %31 = arith.select %29, %19, %30 : vector<16x4xi1>, vector<16x4xf32>
    %cst_12 = arith.constant dense<0x7F800000> : vector<4xf32>
    %32 = vector.multi_reduction <minimumf>, %31, %cst_12 [0] : vector<16x4xf32> to vector<4xf32>
    %33 = vector.shape_cast %32 : vector<4xf32> to vector<1x4xf32>
    %c0_13 = arith.constant 0 : index
    %34 = memref.load %arg8[%c0_13] : memref<1xf32, #tpu.memory_space<smem>>
    %cst_14 = arith.constant 9.99999997E-7 : f32
    %35 = vector.broadcast %cst_14 : f32 to vector<1x4xf32>
    %36 = arith.addf %33, %35 : vector<1x4xf32>
    %37 = vector.broadcast %34 : f32 to vector<1x4xf32>
    %38 = arith.mulf %37, %36 : vector<1x4xf32>
    %39 = vector.broadcast %38 : vector<1x4xf32> to vector<16x4xf32>
    %40 = arith.cmpf ogt, %14, %39 : vector<16x4xf32>
    %41 = arith.extui %40 : vector<16x4xi1> to vector<16x4xi32>
    %42 = arith.sitofp %41 : vector<16x4xi32> to vector<16x4xf32>
    %c0_15 = arith.constant 0 : index
    %c0_16 = arith.constant 0 : index
    %43 = vector.load %arg7[%c0_15, %c0_16] : memref<4x128xf32, #tpu.memory_space<vmem>>, vector<4x128xf32>
    %cst_17 = arith.constant dense<0.000000e+00> : vector<16x128xf32>
    %44 = tpu.matmul %42, %43, %cst_17 {dimension_numbers = #tpu.dot_dimension_numbers<[1], [0], [0], [1], [0, 0, 1, 1], [], []>} : vector<16x4xf32>, vector<4x128xf32>, vector<16x128xf32> -> vector<16x128xf32>
    %45 = vector.broadcast %8 : vector<1x128xf32> to vector<16x128xf32>
    %46 = arith.mulf %44, %45 : vector<16x128xf32>
    %47 = vector.broadcast %6 : vector<1x128xf32> to vector<16x128xf32>
    %48 = arith.addf %47, %46 : vector<16x128xf32>
    %49 = vector.broadcast %9 : vector<1x128xf32> to vector<16x128xf32>
    %50 = arith.mulf %44, %49 : vector<16x128xf32>
    %51 = vector.broadcast %7 : vector<1x128xf32> to vector<16x128xf32>
    %52 = arith.addf %51, %50 : vector<16x128xf32>
    %53 = arith.mulf %3, %48 : vector<16x128xf32>
    %54 = arith.mulf %4, %52 : vector<16x128xf32>
    %55 = arith.subf %53, %54 : vector<16x128xf32>
    %56 = arith.mulf %3, %52 : vector<16x128xf32>
    %57 = arith.mulf %4, %48 : vector<16x128xf32>
    %58 = arith.addf %56, %57 : vector<16x128xf32>
    %c0_18 = arith.constant 0 : index
    %c0_19 = arith.constant 0 : index
    %59 = vector.load %arg3[%c0_18, %c0_19] : memref<16x16xf32, #tpu.memory_space<vmem>>, vector<16x16xf32>
    %cst_20 = arith.constant dense<0.000000e+00> : vector<16x128xf32>
    %60 = tpu.matmul %59, %55, %cst_20 {dimension_numbers = #tpu.dot_dimension_numbers<[1], [0], [0], [1], [0, 0, 1, 1], [], []>} : vector<16x16xf32>, vector<16x128xf32>, vector<16x128xf32> -> vector<16x128xf32>
    %c0_21 = arith.constant 0 : index
    %c0_22 = arith.constant 0 : index
    %61 = vector.load %arg4[%c0_21, %c0_22] : memref<16x16xf32, #tpu.memory_space<vmem>>, vector<16x16xf32>
    %cst_23 = arith.constant dense<0.000000e+00> : vector<16x128xf32>
    %62 = tpu.matmul %61, %58, %cst_23 {dimension_numbers = #tpu.dot_dimension_numbers<[1], [0], [0], [1], [0, 0, 1, 1], [], []>} : vector<16x16xf32>, vector<16x128xf32>, vector<16x128xf32> -> vector<16x128xf32>
    %63 = arith.addf %60, %62 : vector<16x128xf32>
    %c0_24 = arith.constant 0 : index
    %c0_25 = arith.constant 0 : index
    %64 = vector.load %arg9[%c0_24, %c0_25] : memref<16x128xf32, #tpu.memory_space<vmem>>, vector<16x128xf32>
    tpu.vector_store %arg9[%c0_24, %c0_25], %63 {strides = array<i32>} : memref<16x128xf32, #tpu.memory_space<vmem>>, vector<16x128xf32>,
    return
  }
  func.func @transform_0(%arg0: i32) -> (i32, i32) {
    %c0_i32 = arith.constant 0 : i32
    %c0_i32_0 = arith.constant 0 : i32
    return %c0_i32, %arg0 : i32, i32
  }
  func.func @transform_1(%arg0: i32) -> (i32, i32) {
    %c0_i32 = arith.constant 0 : i32
    %c0_i32_0 = arith.constant 0 : i32
    %c0_i32_1 = arith.constant 0 : i32
    return %c0_i32, %c0_i32_0 : i32, i32
  }
  func.func @transform_2(%arg0: i32) -> (i32, i32) {
    %c0_i32 = arith.constant 0 : i32
    %c0_i32_0 = arith.constant 0 : i32
    %c0_i32_1 = arith.constant 0 : i32
    return %c0_i32, %c0_i32_0 : i32, i32
  }
  func.func @transform_3(%arg0: i32) -> (i32, i32) {
    %c0_i32 = arith.constant 0 : i32
    %c0_i32_0 = arith.constant 0 : i32
    %c0_i32_1 = arith.constant 0 : i32
    return %c0_i32, %c0_i32_0 : i32, i32
  }
  func.func @transform_4(%arg0: i32) -> (i32, i32) {
    %c0_i32 = arith.constant 0 : i32
    %c0_i32_0 = arith.constant 0 : i32
    %c0_i32_1 = arith.constant 0 : i32
    return %c0_i32, %c0_i32_0 : i32, i32
  }
  func.func @transform_5(%arg0: i32) -> (i32, i32) {
    %c0_i32 = arith.constant 0 : i32
    %c0_i32_0 = arith.constant 0 : i32
    %c0_i32_1 = arith.constant 0 : i32
    return %c0_i32, %c0_i32_0 : i32, i32
  }
  func.func @transform_6(%arg0: i32) -> (i32, i32) {
    %c0_i32 = arith.constant 0 : i32
    %c0_i32_0 = arith.constant 0 : i32
    %c0_i32_1 = arith.constant 0 : i32
    return %c0_i32, %c0_i32_0 : i32, i32
  }
  func.func @transform_7(%arg0: i32) -> i32 {
    %c0_i32 = arith.constant 0 : i32
    %c0_i32_0 = arith.constant 0 : i32
    return %c0_i32 : i32
  }
  func.func @transform_8(%arg0: i32) -> (i32, i32) {
    %c0_i32 = arith.constant 0 : i32
    %c0_i32_0 = arith.constant 0 : i32
    return %c0_i32, %arg0 : i32, i32
  }
}

</mosaic_0001>

<bundles_post_ra>
// kernel: tpu_custom_call.1
= control target key start
LH: loop header
LB: loop body
LE: loop exit
PB: predicated region body
PF: predicated region fallthrough
CT: control target
= control target key end

     0   :  { %vm1864_vm0 = vcmask 130048   ;;  %s1855_s0 = inlined_call_operand.vmem [shape: f32[16,128], index: 0, kind: input, shape index: {}]   ;;  %s1856_s1 = inlined_call_operand.vmem [shape: f32[32,16], index: 1, kind: input, shape index: {}]   ;;  %s1857_s2 = inlined_call_operand.vmem [shape: f32[16,16], index: 2, kind: input, shape index: {}]   ;;  %s1858_s3 = inlined_call_operand.vmem [shape: f32[16,16], index: 3, kind: input, shape index: {}]   ;;  %s1859_s4 = inlined_call_operand.vmem [shape: f32[4,128], index: 4, kind: input, shape index: {}]   ;;  %s1860_s5 = inlined_call_operand.vmem [shape: f32[128,4], index: 5, kind: input, shape index: {}]   ;;  %s1861_s6 = inlined_call_operand.vmem [shape: f32[4,128], index: 6, kind: input, shape index: {}]   ;;  %s1862_s7 = inlined_call_operand.<no memory space> [shape: f32[1], index: 7, kind: input, shape index: {}]   ;;  %s1863_s8 = inlined_call_operand.hbm [shape: f32[16,128], index: 8, kind: output, shape index: {}]  }
   0x1   :  { %v31_v0 = vld [vmem:[%s1855_s0] sm:$0xff]  ;;  %v32_v1 = vld [vmem:[%s1855_s0 + $0x8] sm:$0xff]  ;;  %v144_v6 = vld [vmem:[%s1860_s5 + $0x10] sm:$0xff] }
   0x2   :  { %v33_v2 = vld [vmem:[%s1856_s1] sm:$0xff]  ;;  %v1219_v3 = vpack.c.bf16 %v32_v1, %v31_v0  ;;  %v143_v5 = vld [vmem:[%s1860_s5 + $0x8] sm:$0xff]  ;;  %v145_v8 = vld [vmem:[%s1860_s5 + $0x18] sm:$0xff] }
   0x3   :  { %1159 = vmatprep.mubr.msk.f32.mxu0 %vm1864_vm0, %v33_v2  ;;  %v142_v4 = vld [vmem:[%s1860_s5] sm:$0xff]  ;;  %v34_v9 = vld [vmem:[%s1856_s1 + $0x8] sm:$0xff]  ;;  %v1227_v10 = vpack.c.bf16 %v145_v8, %v144_v6  ;;  %v35_v13 = vld [vmem:[%s1856_s1 + $0x10] sm:$0xff] }
   0x4   :  { %1220 = vmatprep.subr.bf16.mxu0 %v1219_v3  ;;  %v1223_v7 = vpack.c.bf16 %v143_v5, %v142_v4  ;;  %v146_v11 = vld [vmem:[%s1860_s5 + $0x20] sm:$0xff]  ;;  %v147_v12 = vld [vmem:[%s1860_s5 + $0x28] sm:$0xff] }
   0x5   :  { %1222 = vmatpush3.bf16.msra.mxu0 %v1219_v3 }
   0x6   :  { %1224 = vmatprep.subr.bf16.mxu1 %v1223_v7 }
   0x7   :  { %1226 = vmatpush3.bf16.msra.mxu1 %v1223_v7 }
   0x8   :  { %14 = vsyncpa [#allocation4], 0  ;;  %1160 = vmatmul.mubr.msk.f32.vlgmr.msra.gmra.mrb[0].mxu0 %vm1864_vm0, %v34_v9  ;;  %1228 = vmatprep.subr.bf16.mxu1 %v1227_v10  ;;  %v1231_v14 = vpack.c.bf16 %v147_v12, %v146_v11  ;;  %v36_v15 = vld [vmem:[%s1856_s1 + $0x18] sm:$0xff]  ;;  %v148_v16 = vld [vmem:[%s1860_s5 + $0x30] sm:$0xff]  ;;  %vm776_vm1 = vcmask 1043456   ;;  %v233_v42 = vlaneseq  ;;  %s1296_s12 = smov [#allocation3]  }
   0x9   :  { %1162 = vmatprep.mubr.msk.f32.mxu0 %vm1864_vm0, %v35_v13  ;;  %v149_v17 = vld [vmem:[%s1860_s5 + $0x38] sm:$0xff]  ;;  %v150_v19 = vld [vmem:[%s1860_s5 + $0x40] sm:$0xff]  ;;  %v151_v20 = vld [vmem:[%s1860_s5 + $0x48] sm:$0xff]  ;;  %v1294_v44 = vmov 1966171168   ;;  %s1064_s13 = sshll.u32 %s1296_s12, 4  ;;  %s1065_s13 = int_to_ptr.vmem [resolvable:$true] %s1064_s13 }
   0xa   :  { %v1235_v18 = vpack.c.bf16 %v149_v17, %v148_v16  ;;  %v1239_v21 = vpack.c.bf16 %v151_v20, %v150_v19  ;;  %v152_v22 = vld [vmem:[%s1860_s5 + $0x50] sm:$0xff]  ;;  %v153_v23 = vld [vmem:[%s1860_s5 + $0x58] sm:$0xff]  ;;  %v154_v25 = vld [vmem:[%s1860_s5 + $0x60] sm:$0xff]  ;;  %v1433_v43 = vshrl.u32 %v233_v42, 7  ;;  %v244_v45 = vunpack.c.l.s4 %v1294_v44  ;;  %p1275_p1 = scmp.lt.s32.totalorder %s1065_s13, %s1065_s13 }
   0xb   :  { %1230 = vmatpush3.bf16.msra.mxu1 %v1227_v10  ;;  %v1243_v24 = vpack.c.bf16 %v153_v23, %v152_v22  ;;  %v155_v26 = vld [vmem:[%s1860_s5 + $0x68] sm:$0xff]  ;;  %v156_v28 = vld [vmem:[%s1860_s5 + $0x70] sm:$0xff]  ;;  %v157_v29 = vld [vmem:[%s1860_s5 + $0x78] sm:$0xff] }
   0xc   :  { %1163 = vmatmul.mubr.msk.f32.gmra.mrb[2].mxu0 %vm1864_vm0, %v36_v15  ;;  %1232 = vmatprep.subr.bf16.mxu1 %v1231_v14  ;;  %v1247_v27 = vpack.c.bf16 %v155_v26, %v154_v25  ;;  %v1251_v30 = vpack.c.bf16 %v157_v29, %v156_v28  ;;  %v769_v41 = vld [vmem:[%s1861_s6] sm:$0xf]  ;;  %v235_v46 = vadd.s32 8, %v1433_v43  ;;  %v245_v47 = vunpack.c.0.s8 %v244_v45 }
   0xd   :  { %1200 = vmatprep.subr.msk.mxu0 %vm776_vm1, %v769_v41  ;;  %v1443_v51 = vsub.s32 0, %v1433_v43 }
   0xe   :  { %1201 = vmatpush3.msk.msra.mxu0 %vm776_vm1, %v769_v41  ;;  %vm237_vm2 = vcmp.lt.s32.totalorder %v235_v46, 9  ;;  %v248_v48 = vsub.s32 %v245_v47, %v1433_v43  ;;  %v1865_v41 = vmov 0.0  }
   0xf   :  { %1234 = vmatpush3.bf16.msra.mxu1 %v1231_v14 }
  0x10   :  { %1236 = vmatprep.subr.bf16.mxu1 %v1235_v18 }
  0x13   :  { %1238 = vmatpush3.bf16.msra.mxu1 %v1235_v18 }
  0x14   :  { %1240 = vmatprep.subr.bf16.mxu1 %v1239_v21 }
  0x17   :  { %1242 = vmatpush3.bf16.msra.mxu1 %v1239_v21 }
  0x18   :  { %1244 = vmatprep.subr.bf16.mxu1 %v1243_v24 }
  0x1b   :  { %1246 = vmatpush3.bf16.msra.mxu1 %v1243_v24 }
  0x1c   :  { %1248 = vmatprep.subr.bf16.mxu1 %v1247_v27 }
  0x1f   :  { %1250 = vmatpush3.bf16.msra.mxu1 %v1247_v27 }
  0x20   :  { %1252 = vmatprep.subr.bf16.mxu1 %v1251_v30 }
  0x23   :  { %1254 = vmatpush3.bf16.msra.mxu1 %v1251_v30 }
  0xdb   :  { %v1414_v31 = vpop.f32.mrb[0].mxu0 }
  0xdc   :  { %v1416_v32 = vpop.f32.mrb[1].mxu0  ;;  %v137_v34 = vmul.f32 %v1414_v31, %v1414_v31 }
  0xdd   :  { %v136_v37 = vmul.f32 %v1416_v32, %v1416_v32 }
  0xdf   :  { %v1418_v33 = vpop.f32.mrb[2].mxu0 }
  0xe0   :  { %v139_v35 = vmul.f32 %v1418_v33, %v1418_v33  ;;  %v1424_v36 = vpop.f32.mrb[3].mxu0 }
  0xe1   :  { %v138_v38 = vmul.f32 %v1424_v36, %v1424_v36 }
  0xe2   :  { %v141_v39 = vadd.f32 %v139_v35, %v137_v34 }
  0xe3   :  { %v140_v40 = vadd.f32 %v138_v38, %v136_v37 }
  0xe5   :  { %1197 = vmatprep.mubr.f32.mxu1 %v140_v40 }
  0xe6   :  { %1198 = vmatmul.mubr.f32.vlgmr.msra.gmra.mrb[0].mxu1 %v141_v39 }
 0x1b9   :  { %v1437_v49 = vpop.f32.mrb[0].mxu1 }
 0x1ba   :  { %v1440_v50 = vsel %vm237_vm2, %v1437_v49, 3e+38  ;;  %v1445_v52 = vpop.f32.mrb[1].mxu1 }
 0x1bb   :  { %v242_v53 = vcombine.high %v1445_v52, %v1445_v52  ;;  %v249_v54 = vrot.slane %v1445_v52, %v248_v48  ;;  %v291_v55 = vcombine.high %v1440_v50, %v1440_v50  ;;  %v298_v56 = vrot.slane %v1440_v50, %v248_v48 }
 0x1bc   :  { %v677_v57 = vrot.slane %v1445_v52, 1  ;;  %v678_v58 = vrot.slane %v1445_v52, 2  ;;  %v679_v59 = vrot.slane %v1445_v52, 3  ;;  %v680_v60 = vrot.slane %v1445_v52, 4 }
 0x1bd   :  { %v256_v61 = vrot.slane %v242_v53, %v248_v48  ;;  %v257_v62 = vcombine.high %v249_v54, %v249_v54  ;;  %v265_v63 = vrot.slane %v249_v54, %v248_v48  ;;  %v305_v0 = vrot.slane %v291_v55, %v248_v48 }
 0x1be   :  { %v306_v1 = vcombine.high %v298_v56, %v298_v56  ;;  %v314_v2 = vrot.slane %v298_v56, %v248_v48  ;;  %v681_v3 = vrot.slane %v1445_v52, 5  ;;  %v682_v4 = vrot.slane %v1445_v52, 6 }
 0x1bf   :  { %v258_v5 = vcombine.high %v256_v61, %v256_v61  ;;  %v272_v6 = vrot.slane %v256_v61, %v248_v48  ;;  %v279_v7 = vrot.slane %v257_v62, %v248_v48  ;;  %v287_v8 = vcombine.high %v265_v63, %v265_v63 }
 0x1c0   :  { %v307_v9 = vcombine.high %v305_v0, %v305_v0  ;;  %v321_v10 = vrot.slane %v305_v0, %v248_v48  ;;  %v328_v11 = vrot.slane %v306_v1, %v248_v48  ;;  %v336_v12 = vcombine.high %v314_v2, %v314_v2 }
 0x1c1   :  { %v286_v13 = vrot.slane %v258_v5, %v248_v48  ;;  %v288_v14 = vcombine.high %v272_v6, %v272_v6  ;;  %v289_v15 = vcombine.high %v279_v7, %v279_v7  ;;  %v343_v16 = vrot.slane %v265_v63, %v1443_v51 }
 0x1c2   :  { %v335_v17 = vrot.slane %v307_v9, %v248_v48  ;;  %v337_v18 = vcombine.high %v321_v10, %v321_v10  ;;  %v338_v19 = vcombine.high %v328_v11, %v328_v11  ;;  %v347_v20 = vrot.slane %v279_v7, %v1443_v51 }
 0x1c3   :  { %v290_v21 = vcombine.high %v286_v13, %v286_v13  ;;  %v351_v22 = vrot.slane %v287_v8, %v1443_v51  ;;  %v355_v23 = vrot.slane %v289_v15, %v1443_v51  ;;  %v359_v24 = vrot.slane %v272_v6, %v1443_v51 }
 0x1c4   :  { %v339_v25 = vcombine.high %v335_v17, %v335_v17  ;;  %v363_v26 = vrot.slane %v286_v13, %v1443_v51  ;;  %v367_v27 = vrot.slane %v288_v14, %v1443_v51  ;;  %v375_v28 = vrot.slane %v314_v2, %v1443_v51 }
 0x1c5   :  { %v371_v29 = vrot.slane %v290_v21, %v1443_v51  ;;  %v379_v30 = vrot.slane %v328_v11, %v1443_v51  ;;  %v383_v34 = vrot.slane %v336_v12, %v1443_v51  ;;  %v1471_v35 = vrot.slane %v338_v19, %v1443_v51 }
 0x1c6   :  { %v1474_v37 = vrot.slane %v321_v10, %v1443_v51  ;;  %v1477_v38 = vrot.slane %v335_v17, %v1443_v51  ;;  %v1480_v39 = vrot.slane %v337_v18, %v1443_v51  ;;  %v1483_v40 = vrot.slane %v339_v25, %v1443_v51 }
 0x1c7   :  { %vm420_vm3 = vcmp.le.f32.partialorder %v1445_v52, %v343_v16  ;;  %vm421_vm4 = vcmp.le.f32.partialorder %v1440_v50, %v343_v16  ;;  %vm422_vm5 = vcmp.le.f32.partialorder %v1445_v52, %v347_v20  ;;  %vm423_vm6 = vcmp.le.f32.partialorder %v1440_v50, %v347_v20 }
 0x1c8   :  { %vm424_vm7 = vcmp.le.f32.partialorder %v1445_v52, %v351_v22  ;;  %vm425_vm8 = vcmp.le.f32.partialorder %v1440_v50, %v351_v22  ;;  %vm435_vm0 = vcmp.le.f32.partialorder %v1440_v50, %v371_v29  ;;  %vm438_vm11 = vcmp.le.f32.partialorder %v1445_v52, %v379_v30 }
 0x1c9   :  { %vm443_vm2 = vcmp.le.f32.partialorder %v1440_v50, %v1471_v35  ;;  %vm445_vm10 = vcmp.le.f32.partialorder %v1440_v50, %v1474_v37  ;;  %vm446_vm12 = vcmp.le.f32.partialorder %v1445_v52, %v1477_v38  ;;  %vm447_vm13 = vcmp.le.f32.partialorder %v1440_v50, %v1477_v38 }
 0x1ca   :  { %vm448_vm14 = vcmp.le.f32.partialorder %v1445_v52, %v1480_v39  ;;  %vm449_vm15 = vcmp.le.f32.partialorder %v1440_v50, %v1480_v39  ;;  %vm450_vm1 = vcmp.le.f32.partialorder %v1445_v52, %v1483_v40  ;;  %vm451_vm9 = vcmp.le.f32.partialorder %v1440_v50, %v1483_v40 }
 0x1cb   :  { %v1079_v42 = vsel %vm420_vm3, 1.0, %v1865_v41  ;;  %v1080_v44 = vsel %vm421_vm4, 1.0, %v1865_v41  ;;  %v1081_v45 = vsel %vm422_vm5, 1.0, %v1865_v41  ;;  %v1082_v46 = vsel %vm423_vm6, 1.0, %v1865_v41 }
 0x1cc   :  { %v1083_v47 = vsel %vm424_vm7, 1.0, %v1865_v41  ;;  %v1084_v48 = vsel %vm425_vm8, 1.0, %v1865_v41  ;;  %vm1867_vm3 = vcmp.le.f32.partialorder %v1445_v52, %v355_v23  ;;  %vm1868_vm4 = vcmp.le.f32.partialorder %v1440_v50, %v355_v23 }
 0x1cd   :  { %v1085_v53 = vsel %vm1867_vm3, 1.0, %v1865_v41  ;;  %v1086_v54 = vsel %vm1868_vm4, 1.0, %v1865_v41  ;;  %vm1869_vm5 = vcmp.le.f32.partialorder %v1445_v52, %v359_v24  ;;  %vm1870_vm6 = vcmp.le.f32.partialorder %v1440_v50, %v359_v24 }
 0x1ce   :  { %v1087_v55 = vsel %vm1869_vm5, 1.0, %v1865_v41  ;;  %v1088_v56 = vsel %vm1870_vm6, 1.0, %v1865_v41  ;;  %vm1871_vm7 = vcmp.le.f32.partialorder %v1445_v52, %v363_v26  ;;  %vm1872_vm8 = vcmp.le.f32.partialorder %v1440_v50, %v363_v26 }
 0x1cf   :  { %v1089_v61 = vsel %vm1871_vm7, 1.0, %v1865_v41  ;;  %v1090_v62 = vsel %vm1872_vm8, 1.0, %v1865_v41  ;;  %vm1873_vm3 = vcmp.le.f32.partialorder %v1445_v52, %v367_v27  ;;  %vm1874_vm4 = vcmp.le.f32.partialorder %v1440_v50, %v367_v27 }
 0x1d0   :  { %v1091_v63 = vsel %vm1873_vm3, 1.0, %v1865_v41  ;;  %v1092_v0 = vsel %vm1874_vm4, 1.0, %v1865_v41  ;;  %vm1875_vm5 = vcmp.le.f32.partialorder %v1445_v52, %v371_v29  ;;  %v1094_v2 = vsel %vm435_vm0, 1.0, %v1865_v41 }
 0x1d1   :  { %v1093_v1 = vsel %vm1875_vm5, 1.0, %v1865_v41  ;;  %vm1876_vm6 = vcmp.le.f32.partialorder %v1445_v52, %v375_v28  ;;  %vm1877_vm7 = vcmp.le.f32.partialorder %v1440_v50, %v375_v28  ;;  %v1588_v7 = vsel %vm438_vm11, 1.0, %v1865_v41 }
 0x1d2   :  { %v1578_v5 = vsel %vm1876_vm6, 1.0, %v1865_v41  ;;  %v1583_v6 = vsel %vm1877_vm7, 1.0, %v1865_v41  ;;  %vm1878_vm8 = vcmp.le.f32.partialorder %v1440_v50, %v379_v30  ;;  %vm1879_vm0 = vcmp.le.f32.partialorder %v1445_v52, %v383_v34 }
 0x1d3   :  { %v1593_v8 = vsel %vm1878_vm8, 1.0, %v1865_v41  ;;  %v1598_v9 = vsel %vm1879_vm0, 1.0, %v1865_v41  ;;  %vm1880_vm3 = vcmp.le.f32.partialorder %v1440_v50, %v383_v34  ;;  %vm1881_vm11 = vcmp.le.f32.partialorder %v1445_v52, %v1471_v35 }
 0x1d4   :  { %v1603_v10 = vsel %vm1880_vm3, 1.0, %v1865_v41  ;;  %v1609_v11 = vsel %vm1881_vm11, 1.0, %v1865_v41  ;;  %v1615_v12 = vsel %vm443_vm2, 1.0, %v1865_v41  ;;  %vm1882_vm4 = vcmp.le.f32.partialorder %v1445_v52, %v1474_v37 }
 0x1d5   :  { %v1621_v13 = vsel %vm1882_vm4, 1.0, %v1865_v41  ;;  %v1627_v14 = vsel %vm445_vm10, 1.0, %v1865_v41  ;;  %v1633_v15 = vsel %vm446_vm12, 1.0, %v1865_v41  ;;  %v1639_v16 = vsel %vm447_vm13, 1.0, %v1865_v41 }
 0x1d6   :  { %v1645_v17 = vsel %vm448_vm14, 1.0, %v1865_v41  ;;  %v1651_v18 = vsel %vm449_vm15, 1.0, %v1865_v41  ;;  %v1657_v19 = vsel %vm450_vm1, 1.0, %v1865_v41  ;;  %v1663_v20 = vsel %vm451_vm9, 1.0, %v1865_v41 }
 0x1d7   :  { %vm1883_vm10 = vcmask 31744  }
 0x1d8   :  { %v517_v21 = vsel %vm1883_vm10, %v1079_v42, 0.0  ;;  %vm1884_vm12 = vmmov %vm1883_vm10 }
 0x1d9   :  { %v518_v22 = vsel %vm1884_vm12, %v1080_v44, 0.0  ;;  %vm1885_vm13 = vmmov %vm1883_vm10 }
 0x1da   :  { %v526_v23 = vsel %vm1885_vm13, %v1081_v45, 0.0  ;;  %vm1886_vm14 = vmmov %vm1883_vm10  ;;  %v519_v25 = vadd.f32 %v518_v22, %v517_v21 }
 0x1db   :  { %v527_v24 = vsel %vm1886_vm14, %v1082_v46, 0.0  ;;  %vm1887_vm15 = vmmov %vm1883_vm10 }
 0x1dc   :  { %v528_v26 = vadd.f32 %v527_v24, %v526_v23  ;;  %v535_v27 = vsel %vm1887_vm15, %v1083_v47, 0.0  ;;  %vm1888_vm1 = vmmov %vm1883_vm10  ;;  %v520_v37 = vrot.slane %v519_v25, 4 }
 0x1dd   :  { %v536_v28 = vsel %vm1888_vm1, %v1084_v48, 0.0  ;;  %vm1889_vm2 = vmmov %vm1888_vm1 }
 0x1de   :  { %v537_v29 = vadd.f32 %v536_v28, %v535_v27  ;;  %v544_v30 = vsel %vm1889_vm2, %v1085_v53, 0.0  ;;  %vm1890_vm5 = vmmov %vm1888_vm1  ;;  %v529_v38 = vrot.slane %v528_v26, 4  ;;  %v521_v47 = vadd.f32 %v520_v37, %v519_v25 }
 0x1df   :  { %v545_v34 = vsel %vm1890_vm5, %v1086_v54, 0.0  ;;  %vm1891_vm9 = vmmov %vm1888_vm1 }
 0x1e0   :  { %v553_v35 = vsel %vm1891_vm9, %v1087_v55, 0.0  ;;  %v546_v39 = vadd.f32 %v545_v34, %v544_v30  ;;  %vm1892_vm6 = vmmov %vm1888_vm1  ;;  %v538_v42 = vrot.slane %v537_v29, 4  ;;  %v530_v48 = vadd.f32 %v529_v38, %v528_v26 }
 0x1e1   :  { %v554_v40 = vsel %vm1892_vm6, %v1088_v56, 0.0  ;;  %vm1893_vm7 = vmmov %vm1888_vm1  ;;  %v522_v24 = vrot.slane %v521_v47, 2 }
 0x1e2   :  { %v555_v44 = vadd.f32 %v554_v40, %v553_v35  ;;  %v562_v45 = vsel %vm1893_vm7, %v1089_v61, 0.0  ;;  %vm1894_vm8 = vmmov %vm1888_vm1  ;;  %v547_v21 = vrot.slane %v546_v39, 4  ;;  %v539_v53 = vadd.f32 %v538_v42, %v537_v29 }
 0x1e3   :  { %v563_v46 = vsel %vm1894_vm8, %v1090_v62, 0.0  ;;  %vm1895_vm0 = vmmov %vm1888_vm1  ;;  %v531_v27 = vrot.slane %v530_v48, 2  ;;  %v523_v62 = vadd.f32 %v522_v24, %v521_v47 }
 0x1e4   :  { %v564_v22 = vadd.f32 %v563_v46, %v562_v45  ;;  %v556_v23 = vrot.slane %v555_v44, 4  ;;  %v571_v54 = vsel %vm1895_vm0, %v1091_v63, 0.0  ;;  %vm1896_vm3 = vmmov %vm1895_vm0  ;;  %v548_v28 = vadd.f32 %v547_v21, %v546_v39 }
 0x1e5   :  { %v572_v55 = vsel %vm1896_vm3, %v1092_v0, 0.0  ;;  %v540_v30 = vrot.slane %v539_v53, 2  ;;  %vm1897_vm11 = vmmov %vm1895_vm0  ;;  %v532_v25 = vadd.f32 %v531_v27, %v530_v48  ;;  %v524_v42 = vrot.slane %v523_v62, 1 }
 0x1e6   :  { %v565_v56 = vrot.slane %v564_v22, 4  ;;  %v557_v34 = vadd.f32 %v556_v23, %v555_v44  ;;  %v573_v35 = vadd.f32 %v572_v55, %v571_v54  ;;  %v580_v61 = vsel %vm1897_vm11, %v1093_v1, 0.0  ;;  %vm1898_vm4 = vmmov %vm1895_vm0 }
 0x1e7   :  { %v549_v26 = vrot.slane %v548_v28, 2  ;;  %v541_v38 = vadd.f32 %v540_v30, %v539_v53  ;;  %v581_v63 = vsel %vm1898_vm4, %v1094_v2, 0.0  ;;  %v533_v0 = vrot.slane %v532_v25, 1  ;;  %vm1899_vm10 = vmmov %vm1895_vm0 }
 0x1e8   :  { %v566_v37 = vadd.f32 %v565_v56, %v564_v22  ;;  %v558_v29 = vrot.slane %v557_v34, 2  ;;  %v574_v40 = vrot.slane %v573_v35, 4  ;;  %v582_v44 = vadd.f32 %v581_v63, %v580_v61  ;;  %vm1900_vm12 = vmmov %vm1895_vm0 }
 0x1e9   :  { %v550_v45 = vadd.f32 %v549_v26, %v548_v28  ;;  %v542_v39 = vrot.slane %v541_v38, 1  ;;  %v1681_v23 = vadd.f32 %v524_v42, %v523_v62  ;;  %v1683_v1 = vadd.f32 %v533_v0, %v532_v25  ;;  %vm1901_vm13 = vmmov %vm1895_vm0 }
 0x1ea   :  { %v567_v46 = vrot.slane %v566_v37, 2  ;;  %v559_v21 = vadd.f32 %v558_v29, %v557_v34  ;;  %v575_v41 = vadd.f32 %v574_v40, %v573_v35  ;;  %v583_v55 = vrot.slane %v582_v44, 4  ;;  %vm1902_vm14 = vmmov %vm1895_vm0 }
 0x1eb   :  { %v551_v47 = vrot.slane %v550_v45, 1  ;;  %v1685_v22 = vadd.f32 %v542_v39, %v541_v38  ;;  %v589_v27 = vsel %vm1899_vm10, %v1578_v5, 0.0  ;;  %v590_v28 = vsel %vm1900_vm12, %v1583_v6, 0.0  ;;  %vm1903_vm15 = vmmov %vm1895_vm0 }
 0x1ec   :  { %v568_v48 = vadd.f32 %v567_v46, %v566_v37  ;;  %v560_v53 = vrot.slane %v559_v21, 1  ;;  %v576_v54 = vrot.slane %v575_v41, 2  ;;  %v584_v34 = vadd.f32 %v583_v55, %v582_v44  ;;  %vm1904_vm1 = vmmov %vm1895_vm0 }
 0x1ed   :  { %v1687_v2 = vadd.f32 %v551_v47, %v550_v45  ;;  %v591_v35 = vadd.f32 %v590_v28, %v589_v27  ;;  %v598_v62 = vsel %vm1901_vm13, %v1588_v7, 0.0  ;;  %v599_v25 = vsel %vm1902_vm14, %v1593_v8, 0.0  ;;  %vm1905_vm2 = vmmov %vm1895_vm0 }
 0x1ee   :  { %v569_v24 = vrot.slane %v568_v48, 1  ;;  %v1693_v56 = vadd.f32 %v560_v53, %v559_v21  ;;  %v577_v30 = vadd.f32 %v576_v54, %v575_v41  ;;  %v607_v26 = vsel %vm1903_vm15, %v1598_v9, 0.0  ;;  %vm1906_vm5 = vmmov %vm1895_vm0 }
 0x1ef   :  { %v585_v37 = vrot.slane %v584_v34, 2  ;;  %v592_v38 = vrot.slane %v591_v35, 4  ;;  %v600_v6 = vadd.f32 %v599_v25, %v598_v62  ;;  %v608_v41 = vsel %vm1904_vm1, %v1603_v10, 0.0  ;;  %vm1907_vm9 = vmmov %vm1895_vm0 }
 0x1f0   :  { %v1695_v61 = vadd.f32 %v569_v24, %v568_v48  ;;  %v578_v5 = vrot.slane %v577_v30, 1  ;;  %v616_v29 = vsel %vm1905_vm2, %v1609_v11, 0.0  ;;  %v617_v40 = vsel %vm1906_vm5, %v1615_v12, 0.0  ;;  %vm1908_vm6 = vmmov %vm1895_vm0 }
 0x1f1   :  { %v625_v7 = vsel %vm1907_vm9, %v1621_v13, 0.0  ;;  %v586_v63 = vadd.f32 %v585_v37, %v584_v34  ;;  %v593_v9 = vadd.f32 %v592_v38, %v591_v35  ;;  %v601_v42 = vrot.slane %v600_v6, 4  ;;  %vm1909_vm7 = vmmov %vm1895_vm0 }
 0x1f2   :  { %v1711_v8 = vadd.f32 %v578_v5, %v577_v30  ;;  %v609_v0 = vadd.f32 %v608_v41, %v607_v26  ;;  %v618_v45 = vadd.f32 %v617_v40, %v616_v29  ;;  %v626_v46 = vsel %vm1908_vm6, %v1627_v14, 0.0  ;;  %vm1910_vm8 = vmmov %vm1895_vm0 }
 0x1f3   :  { %v634_v10 = vsel %vm1909_vm7, %v1633_v15, 0.0  ;;  %v587_v11 = vrot.slane %v586_v63, 1  ;;  %v594_v39 = vrot.slane %v593_v9, 2  ;;  %v602_v21 = vadd.f32 %v601_v42, %v600_v6  ;;  %vm1911_vm3 = vmmov %vm1895_vm0 }
 0x1f4   :  { %v627_v12 = vadd.f32 %v626_v46, %v625_v7  ;;  %v610_v44 = vrot.slane %v609_v0, 4  ;;  %v619_v47 = vrot.slane %v618_v45, 4  ;;  %v635_v13 = vsel %vm1910_vm8, %v1639_v16, 0.0  ;;  %vm1912_vm11 = vmmov %vm1895_vm0 }
 0x1f5   :  { %v643_v48 = vsel %vm1895_vm0, %v1645_v17, 0.0  ;;  %v1721_v53 = vadd.f32 %v587_v11, %v586_v63  ;;  %v595_v54 = vadd.f32 %v594_v39, %v593_v9  ;;  %v603_v55 = vrot.slane %v602_v21, 2  ;;  %vm1913_vm4 = vmmov %vm1895_vm0 }
 0x1f6   :  { %v628_v14 = vrot.slane %v627_v12, 4  ;;  %v611_v24 = vadd.f32 %v610_v44, %v609_v0  ;;  %v620_v27 = vadd.f32 %v619_v47, %v618_v45  ;;  %v636_v15 = vadd.f32 %v635_v13, %v634_v10 }
 0x1f7   :  { %v644_v28 = vsel %vm1911_vm3, %v1651_v18, 0.0  ;;  %v596_v30 = vrot.slane %v595_v54, 1  ;;  %v604_v34 = vadd.f32 %v603_v55, %v602_v21  ;;  %v652_v17 = vsel %vm1912_vm11, %v1657_v19, 0.0 }
 0x1f8   :  { %v629_v35 = vadd.f32 %v628_v14, %v627_v12  ;;  %v645_v62 = vadd.f32 %v644_v28, %v643_v48  ;;  %v612_v25 = vrot.slane %v611_v24, 2  ;;  %v621_v16 = vrot.slane %v620_v27, 2 }
 0x1f9   :  { %v637_v26 = vrot.slane %v636_v15, 4  ;;  %v1727_v5 = vadd.f32 %v596_v30, %v595_v54  ;;  %v605_v37 = vrot.slane %v604_v34, 1  ;;  %v653_v18 = vsel %vm1913_vm4, %v1663_v20, 0.0 }
 0x1fa   :  { %v630_v38 = vrot.slane %v629_v35, 2  ;;  %v646_v6 = vrot.slane %v645_v62, 4  ;;  %v613_v41 = vadd.f32 %v612_v25, %v611_v24  ;;  %v622_v29 = vadd.f32 %v621_v16, %v620_v27 }
 0x1fb   :  { %v638_v40 = vadd.f32 %v637_v26, %v636_v15  ;;  %v606_v7 = vadd.f32 %v605_v37, %v604_v34  ;;  %v654_v42 = vadd.f32 %v653_v18, %v652_v17  ;;  %vm661_vm10 = vcmp.ge.f32.partialorder %v1681_v23, 5.0 }
 0x1fc   :  { %v631_v63 = vadd.f32 %v630_v38, %v629_v35  ;;  %v647_v9 = vadd.f32 %v646_v6, %v645_v62  ;;  %v614_v0 = vrot.slane %v613_v41, 1  ;;  %v623_v45 = vrot.slane %v622_v29, 1 }
 0x1fd   :  { %v639_v46 = vrot.slane %v638_v40, 2  ;;  %v655_v11 = vrot.slane %v654_v42, 4  ;;  %vm662_vm12 = vcmp.ge.f32.partialorder %v1683_v1, 5.0  ;;  %vm663_vm13 = vcmp.ge.f32.partialorder %v1685_v22, 5.0 }
 0x1fe   :  { %v632_v19 = vrot.slane %v631_v63, 1  ;;  %v648_v10 = vrot.slane %v647_v9, 2  ;;  %v615_v39 = vadd.f32 %v614_v0, %v613_v41  ;;  %v624_v21 = vadd.f32 %v623_v45, %v622_v29 }
 0x1ff   :  { %v640_v12 = vadd.f32 %v639_v46, %v638_v40  ;;  %vm723_vm14 = vcmask 24576   ;;  %v656_v47 = vadd.f32 %v655_v11, %v654_v42  ;;  %vm664_vm15 = vcmp.ge.f32.partialorder %v1687_v2, 5.0 }
 0x200   :  { %v633_v20 = vadd.f32 %v632_v19, %v631_v63  ;;  %v649_v44 = vadd.f32 %v648_v10, %v647_v9  ;;  %vm665_vm1 = vcmp.ge.f32.partialorder %v1693_v56, 5.0  ;;  %vm666_vm2 = vcmp.ge.f32.partialorder %v1695_v61, 5.0 }
 0x201   :  { %v641_v13 = vrot.slane %v640_v12, 1  ;;  %vm667_vm5 = vcmp.ge.f32.partialorder %v1711_v8, 5.0  ;;  %v657_v54 = vrot.slane %v656_v47, 2  ;;  %vm668_vm9 = vcmp.ge.f32.partialorder %v1721_v53, 5.0 }
 0x202   :  { %v650_v48 = vrot.slane %v649_v44, 1  ;;  %vm669_vm6 = vcmp.ge.f32.partialorder %v1727_v5, 5.0  ;;  %vm670_vm7 = vcmp.ge.f32.partialorder %v606_v7, 5.0  ;;  %vm671_vm8 = vcmp.ge.f32.partialorder %v615_v39, 5.0 }
 0x203   :  { %v642_v55 = vadd.f32 %v641_v13, %v640_v12  ;;  %vm672_vm0 = vcmp.ge.f32.partialorder %v624_v21, 5.0  ;;  %v658_v24 = vadd.f32 %v657_v54, %v656_v47  ;;  %vm673_vm3 = vcmp.ge.f32.partialorder %v633_v20, 5.0 }
 0x204   :  { %v651_v14 = vadd.f32 %v650_v48, %v649_v44  ;;  %v683_v27 = vrot.slane %v1445_v52, 7  ;;  %v684_v15 = vrot.slane %v1440_v50, 1  ;;  %v685_v28 = vrot.slane %v1440_v50, 2 }
 0x205   :  { %vm674_vm11 = vcmp.ge.f32.partialorder %v642_v55, 5.0  ;;  %v686_v30 = vrot.slane %v1440_v50, 3  ;;  %v659_v34 = vrot.slane %v658_v24, 1  ;;  %v687_v35 = vrot.slane %v1440_v50, 4 }
 0x206   :  { %vm675_vm4 = vcmp.ge.f32.partialorder %v651_v14, 5.0  ;;  %v688_v62 = vrot.slane %v1440_v50, 5  ;;  %v689_v25 = vrot.slane %v1440_v50, 6  ;;  %v690_v16 = vrot.slane %v1440_v50, 7 }
 0x207   :  { %v707_v26 = vsel %vm661_vm10, %v1445_v52, 3e+38  ;;  %v708_v17 = vsel %vm662_vm12, %v677_v57, 3e+38  ;;  %v660_v37 = vadd.f32 %v659_v34, %v658_v24  ;;  %v709_v38 = vsel %vm663_vm13, %v678_v58, 3e+38 }
 0x208   :  { %v710_v6 = vsel %vm664_vm15, %v679_v59, 3e+38  ;;  %v711_v23 = vsel %vm665_vm1, %v680_v60, 3e+38  ;;  %v712_v57 = vsel %vm666_vm2, %v681_v3, 3e+38 }
 0x209   :  { %v713_v58 = vsel %vm667_vm5, %v682_v4, 3e+38  ;;  %v714_v1 = vsel %vm668_vm9, %v683_v27, 3e+38  ;;  %vm676_vm10 = vcmp.ge.f32.partialorder %v660_v37, 5.0  ;;  %v724_v22 = vsel %vm723_vm14, %v707_v26, inf }
 0x20a   :  { %v715_v59 = vsel %vm669_vm6, %v1440_v50, 3e+38  ;;  %v716_v60 = vsel %vm670_vm7, %v684_v15, 3e+38  ;;  %v717_v2 = vsel %vm671_vm8, %v685_v28, 3e+38  ;;  %v757_v15 = vstv %s1862_s7 }
 0x20b   :  { %v718_v3 = vsel %vm672_vm0, %v686_v30, 3e+38  ;;  %v719_v56 = vsel %vm673_vm3, %v687_v35, 3e+38  ;;  %v720_v4 = vsel %vm674_vm11, %v688_v62, 3e+38 }
 0x20c   :  { %v721_v61 = vsel %vm675_vm4, %v689_v25, 3e+38  ;;  %v722_v8 = vsel %vm676_vm10, %v690_v16, 3e+38  ;;  %v725_v53 = vsel %vm723_vm14, %v708_v17, inf  ;;  %v726_v5 = vsel %vm723_vm14, %v709_v38, inf }
 0x20d   :  { %v727_v50 = vsel %vm723_vm14, %v710_v6, inf  ;;  %v728_v41 = vsel %vm723_vm14, %v711_v23, inf  ;;  %v730_v40 = vsel %vm723_vm14, %v712_v57, inf  ;;  %v732_v18 = vsel %vm723_vm14, %v713_v58, inf  ;;  %v893_v16 = vld [vmem:[%s1858_s3] sm:$0xff] }
 0x20e   :  { %v729_v29 = vmin.f32 %v724_v22, %v728_v41  ;;  %v734_v7 = vsel %vm723_vm14, %v714_v1, inf  ;;  %v731_v63 = vmin.f32 %v725_v53, %v730_v40  ;;  %v733_v9 = vmin.f32 %v726_v5, %v732_v18 }
 0x20f   :  { %v735_v42 = vmin.f32 %v727_v50, %v734_v7  ;;  %v736_v0 = vsel %vm723_vm14, %v715_v59, inf  ;;  %v738_v46 = vsel %vm723_vm14, %v716_v60, inf  ;;  %v740_v19 = vsel %vm723_vm14, %v717_v2, inf }
 0x210   :  { %v737_v45 = vmin.f32 %v729_v29, %v736_v0  ;;  %v742_v10 = vsel %vm723_vm14, %v718_v3, inf  ;;  %v739_v11 = vmin.f32 %v731_v63, %v738_v46  ;;  %v741_v39 = vmin.f32 %v733_v9, %v740_v19 }
 0x211   :  { %v743_v21 = vmin.f32 %v735_v42, %v742_v10  ;;  %v744_v12 = vsel %vm723_vm14, %v719_v56, inf  ;;  %v746_v44 = vsel %vm723_vm14, %v720_v4, inf  ;;  %v748_v47 = vsel %vm723_vm14, %v721_v61, inf }
 0x212   :  { %v745_v20 = vmin.f32 %v737_v45, %v744_v12  ;;  %v750_v13 = vsel %vm723_vm14, %v722_v8, inf  ;;  %v747_v48 = vmin.f32 %v739_v11, %v746_v44  ;;  %v749_v54 = vmin.f32 %v741_v39, %v748_v47 }
 0x213   :  { %v751_v55 = vmin.f32 %v743_v21, %v750_v13  ;;  %v1914_v35 = vmov 0.0   ;;  %vm1915_vm14 = vcmask 31744   ;;  %vm1917_vm1 = vcmask 130048  }
 0x214   :  { %v752_v14 = vmin.f32 %v745_v20, %v747_v48  ;;  %vm1916_vm15 = vmmov %vm1915_vm14  ;;  %v857_v26 = vsub.s32 2, %v1433_v43  ;;  %v875_v17 = vsub.s32 1, %v1433_v43 }
 0x215   :  { %v753_v24 = vmin.f32 %v749_v54, %v751_v55  ;;  %vm1918_vm2 = vmmov %vm1917_vm1 }
 0x216   :  { %vm1919_vm5 = vmmov %vm1917_vm1 }
 0x217   :  { %v754_v27 = vmin.f32 %v752_v14, %v753_v24  ;;  %vm1920_vm9 = vmmov %vm1917_vm1 }
 0x219   :  { %v756_v28 = vadd.f32 1e-06, %v754_v27 }
 0x21b   :  { %v758_v30 = vmul.f32 %v757_v15, %v756_v28 }
 0x21d   :  { %v762_v34 = vrot.slane %v758_v30, %v1443_v51 }
 0x21f   :  { %vm763_vm12 = vcmp.gt.f32.partialorder %v1445_v52, %v762_v34  ;;  %vm764_vm13 = vcmp.gt.f32.partialorder %v1437_v49, %v762_v34  ;;  %v869_v52 = vsub.s32 3, %v1433_v43  ;;  %v135_v49 = vld [vmem:[%s1859_s4] sm:$0xf] }
 0x220   :  { %v1111_v62 = vsel %vm763_vm12, 1.0, %v1914_v35  ;;  %v1112_v25 = vsel %vm764_vm13, 1.0, %v1914_v35  ;;  %v858_v37 = vrot.slane %v135_v49, %v857_v26  ;;  %v864_v6 = vrot.slane %v135_v49, %v1443_v51 }
 0x221   :  { %1202 = vmatprep.mubr.msk.f32.mxu0 %vm1915_vm14, %v1111_v62  ;;  %v870_v38 = vrot.slane %v135_v49, %v869_v52  ;;  %v876_v23 = vrot.slane %v135_v49, %v875_v17 }
 0x222   :  { %1203 = vmatmul.mubr.msk.f32.vlgmr.msra.gmra.mrb[4].mxu0 %vm1916_vm15, %v1112_v25 }
 0x223   :  { %1209 = vmatprep.mubr.msk.f32.mxu0 %vm1917_vm1, %v893_v16 }
 0x2f5   :  { %v1204_v57 = vpop.f32.mrb[4].mxu0 }
 0x2f6   :  { %v860_v58 = vmul.f32 %v1204_v57, %v858_v37  ;;  %v872_v1 = vmul.f32 %v1204_v57, %v870_v38  ;;  %v846_v59 = vpop.f32.mrb[5].mxu0 }
 0x2f7   :  { %v859_v60 = vmul.f32 %v858_v37, %v846_v59  ;;  %v871_v22 = vmul.f32 %v870_v38, %v846_v59 }
 0x2f8   :  { %v866_v2 = vadd.f32 %v864_v6, %v860_v58  ;;  %v878_v3 = vadd.f32 %v876_v23, %v872_v1 }
 0x2f9   :  { %v865_v56 = vadd.f32 %v864_v6, %v859_v60  ;;  %v877_v4 = vadd.f32 %v876_v23, %v871_v22 }
 0x2fa   :  { %v880_v61 = vmul.f32 %v1414_v31, %v866_v2  ;;  %v882_v8 = vmul.f32 %v1418_v33, %v878_v3  ;;  %v886_v43 = vmul.f32 %v1414_v31, %v878_v3  ;;  %v888_v53 = vmul.f32 %v1418_v33, %v866_v2  ;;  %v894_v31 = vld [vmem:[%s1858_s3 + $0x8] sm:$0xff]  ;;  %v891_v33 = vld [vmem:[%s1857_s2] sm:$0xff]  ;;  %s1270_s3 = scalar_lea.vmem %s1065_s13, 256 }
 0x2fb   :  { %v879_v51 = vmul.f32 %v865_v56, %v1416_v32  ;;  %v881_v5 = vmul.f32 %v877_v4, %v1424_v36  ;;  %v885_v50 = vmul.f32 %v877_v4, %v1416_v32  ;;  %v887_v41 = vmul.f32 %v865_v56, %v1424_v36  ;;  %v892_v32 = vld [vmem:[%s1857_s2 + $0x8] sm:$0xff]  ;;  %p1271_p0 = scmp.ne.s32.totalorder %s1065_s13, %s1270_s3  ;;  %p1276_p2 = scmp.lt.s32.totalorder %s1270_s3, %s1270_s3 }
 0x2fc   :  { %v890_v29 = vadd.f32 %v888_v53, %v886_v43  ;;  %v884_v40 = vsub.f32 %v880_v61, %v882_v8 }
 0x2fd   :  { %v889_v18 = vadd.f32 %v887_v41, %v885_v50  ;;  %v883_v7 = vsub.f32 %v879_v51, %v881_v5  ;;  %p1277_p3 = por %p1276_p2, %p1275_p1 }
 0x2ff   :  { %v1255_v63 = vpack.c.bf16 %v890_v29, %v889_v18  ;;  %v1259_v9 = vpack.c.bf16 %v884_v40, %v883_v7  ;;  %p1278_p4 = pnand %p1277_p3, %p1271_p0 }
 0x301   :  { %1256 = vmatprep.subr.bf16.mxu0 %v1255_v63 }
 0x302   :  { %1258 = vmatpush3.bf16.msra.mxu0 %v1255_v63 }
 0x303   :  { %1260 = vmatprep.subr.bf16.mxu0 %v1259_v9 }
 0x305   :  { %1210 = vmatmul.mubr.msk.f32.vlgmr.msra.gmra.mrb[6].mxu0 %vm1918_vm2, %v894_v31 }
 0x306   :  { %1262 = vmatpush3.bf16.msra.mxu0 %v1259_v9  ;;  %1216 = vmatprep.mubr.msk.f32.mxu0 %vm1919_vm5, %v891_v33 }
 0x30d   :  { %1217 = vmatmul.mubr.msk.f32.vlgmr.msra.gmra.mrb[6].mxu0 %vm1920_vm9, %v892_v32 }
 0x3e0   :  { %v1218_v36 = vpop.f32.mrb[6].mxu0 }
 0x3e1   :  { %1058 = vst [vmem:[#allocation3 + $0x8] sm:$0xff] %v1218_v36  ;;  %v1048_v42 = vpop.f32.mrb[7].mxu0 }
 0x3e2   :  { %1057 = vst [vmem:[#allocation3] sm:$0xff] %v1048_v42 }
 0x3e3   :  { %1281 = shalt.err (!%p1278_p4)
}
 0x3e4   :  { %s1282_s2 = scalar_lea.hbm %s1863_s8, 256 }
 0x3e5   :  { %p1283_p5 = scmp.ne.s32.totalorder %s1863_s8, %s1282_s2  ;;  %p1286_p6 = scmp.lt.u32.totalorder %s1282_s2, %s1863_s8 }
 0x3e7   :  { %p1288_p7 = pnand %p1286_p6, %p1283_p5 }
 0x3e9   :  { %1291 = shalt.err (!%p1288_p7)
}
 0x3ea   :  { %s1297_s18 = smov 128   ;;  %s1298_s19 = smov 8  }
 0x3eb   :  { %1070 = dma.vmem_to_hbm [thread:$0]  %s1065_s13, 256, %s1863_s8, [#allocation4], %s1297_s18, %s1297_s18, %s1298_s19  }
 0x3ec   :  { %1292 = dma.done.wait [#allocation4], 256  }
 0x3ed   :  { %1293 = vsyncadd [#allocation4], 4294967040 }
 0x3ee   :  { %1074 = vsyncpa [#allocation4], 1 }

</bundles_post_ra>
